<compile_context>
chip_gen: v5e
topology: v5e:2x2
jax: 0.10.0
libtpu: 0.0.40
codegen_flags: <defaults>
</compile_context>

<pallas_src>
import functools

import jax
import jax.numpy as jnp
from jax.experimental import pallas as pl
from jax.experimental.pallas import tpu as pltpu


# ----------------------------- Pallas kernel --------------------------------

def gcblock_kernel(xw_ref, w1_ref, bs1_ref, w2_ref, b2_ref, sr_ref, br_ref,
                   out_ref, *, Wp, TH, Co):
    f32 = jnp.float32
    L = TH * Wp                                        # spatial length of the output tile

    xf = xw_ref[...]                                   # (C, Lp2) activation window (compute dtype)

    # Stage 1: one fused MXU call = 9 taps x 2 3x3 branches + the 1x1-path conv1.
    z = jnp.dot(w1_ref[...], xf, preferred_element_type=f32)        # (19*Co, Lp2) f32

    # Accumulate the 9 spatially shifted taps of the two 3x3 branches into one
    # f32 accumulator (shift-after-matmul: slices of z, no extra activation DMA).
    acc = z[0:2 * Co, 0:L]                                          # tap (kh=0, kw=0)
    for t in range(1, 9):
        kh, kw = divmod(t, 3)
        off = kh * Wp + kw
        acc = acc + z[t * 2 * Co:(t + 1) * 2 * Co, off:off + L]     # (2*Co, L)

    offc = Wp + 1                                                   # center-tap offset
    y1 = z[18 * Co:19 * Co, offc:offc + L]                          # (Co, L) 1x1-path conv1

    # Stage 2: the three second 1x1 convs fused into one matmul (K = 3*Co).
    s2 = jnp.concatenate([acc, y1], axis=0) + bs1_ref[...]          # (3*Co, L) f32
    out2 = jnp.dot(w2_ref[...], s2.astype(w2_ref.dtype),
                   preferred_element_type=f32) + b2_ref[...]        # (Co, L)

    # Residual BN path (Cout == Cin, stride == 1); epilogue kept in f32.
    xc = xf[:, offc:offc + L].astype(f32)                           # (C, L) center tap
    resid = xc * sr_ref[...] + br_ref[...]

    out_ref[...] = jnp.maximum(out2 + resid, 0.0).astype(out_ref.dtype)


# ------------------------------- wrapper -------------------------------------

def _pick_tile_h(H, W, C, Co, act_bytes, vmem_budget=24 * 1024 * 1024):
    """Largest divisor of H whose per-step working set fits the VMEM budget.

    Use a smaller budget (~12-16 MiB) when targeting v7x (64 MiB VMEM per core)."""
    best = 1
    for th in range(1, H + 1):
        if H % th:
            continue
        wp = W + 2
        lp2 = (th + 2) * wp + 2
        l = th * wp
        vmem = (2 * C * lp2 * act_bytes          # double-buffered activation window
                + 2 * Co * l * 4                 # double-buffered output tile
                + 19 * Co * lp2 * 4              # fused stage-1 intermediate (f32)
                + 6 * Co * l * 4)                # accumulator / stage-2 temporaries
        if vmem <= vmem_budget:
            best = th
    return best


def gcblock_forward(x_nchw, params, *, tile_h=None, compute_dtype=jnp.bfloat16):
    N, C, H, W = x_nchw.shape
    Co = params['w2'].shape[0]
    assert Co == C, "only the residual (out_channels == in_channels, stride == 1) config is implemented"

    Wp = W + 2
    act_bytes = jnp.dtype(compute_dtype).itemsize
    if tile_h is None:
        tile_h = _pick_tile_h(H, W, C, Co, act_bytes)
    assert H % tile_h == 0, "tile_h must divide H"
    TH = tile_h
    n_th = H // TH
    L = TH * Wp
    Lp2 = (TH + 2) * Wp + 2     # +2 so the bottom-right tap's shifted slice stays in bounds

    # Pad spatially (NCHW is already channel-major: no NHWC transpose), cut
    # overlapping (TH+2)-row windows and flatten each to (C, (TH+2)*(W+2)+2).
    xpad = jnp.pad(x_nchw, ((0, 0), (0, 0), (1, 1), (1, 1)))             # (N, C, H+2, Wp)
    wins = jnp.stack([xpad[:, :, t * TH:t * TH + TH + 2, :] for t in range(n_th)],
                     axis=1)                                             # (N, n_th, C, TH+2, Wp)
    xw = wins.reshape(N, n_th, C, (TH + 2) * Wp)
    xw = jnp.pad(xw, ((0, 0), (0, 0), (0, 0), (0, 2))).astype(compute_dtype)   # (N, n_th, C, Lp2)

    w1 = params['w1'].astype(compute_dtype)      # (19*Co, C)  fused stage-1 weights
    w2 = params['w2'].astype(compute_dtype)      # (Co, 3*Co)  fused stage-2 weights
    bs1, b2 = params['bs1'], params['b2']        # (3*Co, 1), (Co, 1) f32
    sr, br = params['sr'], params['br']          # (C, 1) f32 residual-BN affine

    kernel = functools.partial(gcblock_kernel, Wp=Wp, TH=TH, Co=Co)

    flops = 2 * N * n_th * (19 * Co * C * Lp2 + 3 * Co * Co * L)
    bytes_accessed = (xw.size * xw.dtype.itemsize + N * n_th * Co * L * 4
                      + w1.size * w1.dtype.itemsize + w2.size * w2.dtype.itemsize
                      + 4 * (bs1.size + b2.size + sr.size + br.size))

    out = pl.pallas_call(
        kernel,
        out_shape=jax.ShapeDtypeStruct((N, n_th, Co, L), jnp.float32),
        grid=(N, n_th),
        in_specs=[
            pl.BlockSpec((None, None, C, Lp2), lambda n, t: (n, t, 0, 0)),
            # Weights / biases are grid-invariant (constant block index -> no re-DMA).
            pl.BlockSpec((19 * Co, C), lambda n, t: (0, 0)),
            pl.BlockSpec((3 * Co, 1), lambda n, t: (0, 0)),
            pl.BlockSpec((Co, 3 * Co), lambda n, t: (0, 0)),
            pl.BlockSpec((Co, 1), lambda n, t: (0, 0)),
            pl.BlockSpec((C, 1), lambda n, t: (0, 0)),
            pl.BlockSpec((C, 1), lambda n, t: (0, 0)),
        ],
        out_specs=pl.BlockSpec((None, None, Co, L), lambda n, t: (n, t, 0, 0)),
        compiler_params=pltpu.CompilerParams(
            dimension_semantics=("parallel", "parallel")),
        cost_estimate=pl.CostEstimate(flops=int(flops), transcendentals=0,
                                      bytes_accessed=int(bytes_accessed)),
    )(xw, w1, bs1, w2, b2, sr, br)

    # (N, n_th, Co, TH*Wp) -> (N, Co, H, W): drop the 2 junk padded columns per row.
    out = out.reshape(N, n_th, Co, TH, Wp)
    out = out.transpose(0, 2, 1, 3, 4).reshape(N, Co, H, Wp)
    return out[:, :, :, :W]


# ------------------------- parameter setup (glue) ----------------------------

def init_raw_params(key, C, Co):
    keys = iter(jax.random.split(key, 64))

    def w(shape):
        return 0.1 * jax.random.normal(next(keys), shape, jnp.float32)

    def bn(ch):
        return dict(
            gamma=jax.random.uniform(next(keys), (ch,), jnp.float32, 0.5, 1.5),
            beta=0.1 * jax.random.normal(next(keys), (ch,), jnp.float32),
            mean=0.1 * jax.random.normal(next(keys), (ch,), jnp.float32),
            var=jax.random.uniform(next(keys), (ch,), jnp.float32, 0.5, 1.5),
        )

    return dict(
        p3a=dict(w3=w((Co, C, 3, 3)), bn1=bn(Co), w1=w((Co, Co, 1, 1)), bn2=bn(Co)),
        p3b=dict(w3=w((Co, C, 3, 3)), bn1=bn(Co), w1=w((Co, Co, 1, 1)), bn2=bn(Co)),
        p11=dict(wa=w((Co, C, 1, 1)), bn1=bn(Co), wb=w((Co, Co, 1, 1)), bn2=bn(Co)),
        bnid=bn(C),
    )


def fold_params(raw, C, Co, eps=1e-5):
    """Fold eval-mode BN into the convs and pre-fuse the branch weights."""
    def fbn(p):
        s = p['gamma'] / jnp.sqrt(p['var'] + eps)
        return s, p['beta'] - p['mean'] * s

    def fold3(branch):
        s1, b1 = fbn(branch['bn1'])
        k = branch['w3'] * s1[:, None, None, None]          # (Co, C, 3, 3)
        s2, b2 = fbn(branch['bn2'])
        w1 = branch['w1'][:, :, 0, 0] * s2[:, None]         # (Co, Co)
        return k, b1, w1, b2

    ka, b1a, w1a, b2a = fold3(raw['p3a'])
    kb, b1b, w1b, b2b = fold3(raw['p3b'])

    s1p, b1p = fbn(raw['p11']['bn1'])
    wp1 = raw['p11']['wa'][:, :, 0, 0] * s1p[:, None]       # (Co, C)
    s2p, b2p = fbn(raw['p11']['bn2'])
    wp2 = raw['p11']['wb'][:, :, 0, 0] * s2p[:, None]       # (Co, Co)

    # Stage-1 fused weight: per-tap [branch_a ; branch_b] blocks, then the 1x1-path conv.
    rows = []
    for kh in range(3):
        for kw in range(3):
            rows.append(ka[:, :, kh, kw])
            rows.append(kb[:, :, kh, kw])
    rows.append(wp1)
    w1cat = jnp.concatenate(rows, axis=0)                   # (19*Co, C)

    bs1 = jnp.concatenate([b1a, b1b, b1p]).reshape(3 * Co, 1)
    w2 = jnp.concatenate([w1a, w1b, wp2], axis=1)           # (Co, 3*Co)
    b2 = (b2a + b2b + b2p).reshape(Co, 1)

    srs, brs = fbn(raw['bnid'])
    return dict(w1=w1cat, bs1=bs1, w2=w2, b2=b2,
                sr=srs.reshape(C, 1), br=brs.reshape(C, 1))


# ------------------------- pure-JAX reference (NCHW) -------------------------

def reference_forward(x, raw, eps=1e-5):
    dn = ('NCHW', 'OIHW', 'NCHW')
    hp = jax.lax.Precision.HIGHEST

    def conv(xx, w, pad):
        return jax.lax.conv_general_dilated(
            xx, w, (1, 1), ((pad, pad), (pad, pad)),
            dimension_numbers=dn, precision=hp)

    def bn(xx, p):
        s = p['gamma'] / jnp.sqrt(p['var'] + eps)
        b = p['beta'] - p['mean'] * s
        return xx * s[None, :, None, None] + b[None, :, None, None]

    def block3x3(p):
        y = bn(conv(x, p['w3'], 1), p['bn1'])
        return bn(conv(y, p['w1'], 0), p['bn2'])

    def block1x1(p):
        y = bn(conv(x, p['wa'], 0), p['bn1'])
        return bn(conv(y, p['wb'], 0), p['bn2'])

    out = (block3x3(raw['p3a']) + block3x3(raw['p3b'])
           + block1x1(raw['p11']) + bn(x, raw['bnid']))
    return jnp.maximum(out, 0.0)


# ----------------------------------- main ------------------------------------

if __name__ == "__main__":
    N, C, H, W = 2, 4, 16, 16
    Co = 4  # out_channels == in_channels, stride == 1 -> residual BN path exists

    key = jax.random.PRNGKey(0)
    kx, kp = jax.random.split(key)
    x = jax.random.normal(kx, (N, C, H, W), jnp.float32)

    raw = init_raw_params(kp, C, Co)
    params = fold_params(raw, C, Co)
    ref = reference_forward(x, raw)

    # 1) f32 matmul inputs: validates exact forward semantics.
    out_f32 = jax.block_until_ready(
        gcblock_forward(x, params, tile_h=8, compute_dtype=jnp.float32))
    assert out_f32.shape == (N, Co, H, W)
    err_f32 = float(jnp.max(jnp.abs(out_f32 - ref)))
    if err_f32 > 1e-2:
        raise AssertionError(f"Pallas f32 kernel mismatch vs reference: max abs err = {err_f32}")

    # 2) bf16 matmul inputs (perf config for v5e/v6e/v7x), f32 accumulation/epilogue.
    #    Tolerance is consciously loosened for the bf16 activation/weight rounding.
    out_bf16 = jax.block_until_ready(
        gcblock_forward(x, params, tile_h=8, compute_dtype=jnp.bfloat16))
    err_bf16 = float(jnp.max(jnp.abs(out_bf16 - ref)))
    if err_bf16 > 1e-1:
        raise AssertionError(f"Pallas bf16 kernel mismatch vs reference: max abs err = {err_bf16}")

    print("KERNEL_OK")
</pallas_src>

<mosaic_0001>
module attributes {stable_mosaic.version = 11 : i64} {
  func.func @gcblock_kernel(%arg0: i32, %arg1: i32, %arg2: memref<1x1x4x182xf32, #tpu.memory_space<vmem>>, %arg3: memref<76x4xf32, #tpu.memory_space<vmem>>, %arg4: memref<12x1xf32, #tpu.memory_space<vmem>>, %arg5: memref<4x12xf32, #tpu.memory_space<vmem>>, %arg6: memref<4x1xf32, #tpu.memory_space<vmem>>, %arg7: memref<4x1xf32, #tpu.memory_space<vmem>>, %arg8: memref<4x1xf32, #tpu.memory_space<vmem>>, %arg9: memref<1x1x4x144xf32, #tpu.memory_space<vmem>>) attributes {dimension_semantics = [#tpu.dimension_semantics<parallel>, #tpu.dimension_semantics<parallel>], iteration_bounds = array<i64: 2, 2>, scalar_prefetch = 0 : i64, scratch_operands = 0 : i64, tpu.core_type = #tpu.core_type<tc>, window_params = [{transform_indices = @transform_0, window_bounds = array<i64: 1, 1, 4, 182>}, {pipeline_mode = #tpu.pipeline_mode<synchronous>, transform_indices = @transform_1, window_bounds = array<i64: 76, 4>}, {pipeline_mode = #tpu.pipeline_mode<synchronous>, transform_indices = @transform_2, window_bounds = array<i64: 12, 1>}, {pipeline_mode = #tpu.pipeline_mode<synchronous>, transform_indices = @transform_3, window_bounds = array<i64: 4, 12>}, {pipeline_mode = #tpu.pipeline_mode<synchronous>, transform_indices = @transform_4, window_bounds = array<i64: 4, 1>}, {pipeline_mode = #tpu.pipeline_mode<synchronous>, transform_indices = @transform_5, window_bounds = array<i64: 4, 1>}, {pipeline_mode = #tpu.pipeline_mode<synchronous>, transform_indices = @transform_6, window_bounds = array<i64: 4, 1>}, {transform_indices = @transform_7, window_bounds = array<i64: 1, 1, 4, 144>}]} {
    %c0 = arith.constant 0 : index
    %c0_0 = arith.constant 0 : index
    %c0_1 = arith.constant 0 : index
    %c0_2 = arith.constant 0 : index
    %0 = vector.load %arg2[%c0, %c0_0, %c0_1, %c0_2] : memref<1x1x4x182xf32, #tpu.memory_space<vmem>>, vector<1x1x4x182xf32>
    %1 = vector.shape_cast %0 : vector<1x1x4x182xf32> to vector<4x182xf32>
    %c0_3 = arith.constant 0 : index
    %c0_4 = arith.constant 0 : index
    %2 = vector.load %arg3[%c0_3, %c0_4] : memref<76x4xf32, #tpu.memory_space<vmem>>, vector<76x4xf32>
    %cst = arith.constant dense<0.000000e+00> : vector<76x182xf32>
    %3 = tpu.matmul %2, %1, %cst {dimension_numbers = #tpu.dot_dimension_numbers<[1], [0], [0], [1], [0, 0, 1, 1], [], []>} : vector<76x4xf32>, vector<4x182xf32>, vector<76x182xf32> -> vector<76x182xf32>
    %4 = vector.extract_strided_slice %3 {offsets = [0, 0], sizes = [8, 144], strides = [1, 1]} : vector<76x182xf32> to vector<8x144xf32>
    %5 = vector.extract_strided_slice %3 {offsets = [8, 1], sizes = [8, 144], strides = [1, 1]} : vector<76x182xf32> to vector<8x144xf32>
    %6 = arith.addf %4, %5 : vector<8x144xf32>
    %7 = vector.extract_strided_slice %3 {offsets = [16, 2], sizes = [8, 144], strides = [1, 1]} : vector<76x182xf32> to vector<8x144xf32>
    %8 = arith.addf %6, %7 : vector<8x144xf32>
    %9 = vector.extract_strided_slice %3 {offsets = [24, 18], sizes = [8, 144], strides = [1, 1]} : vector<76x182xf32> to vector<8x144xf32>
    %10 = arith.addf %8, %9 : vector<8x144xf32>
    %11 = vector.extract_strided_slice %3 {offsets = [32, 19], sizes = [8, 144], strides = [1, 1]} : vector<76x182xf32> to vector<8x144xf32>
    %12 = arith.addf %10, %11 : vector<8x144xf32>
    %13 = vector.extract_strided_slice %3 {offsets = [40, 20], sizes = [8, 144], strides = [1, 1]} : vector<76x182xf32> to vector<8x144xf32>
    %14 = arith.addf %12, %13 : vector<8x144xf32>
    %15 = vector.extract_strided_slice %3 {offsets = [48, 36], sizes = [8, 144], strides = [1, 1]} : vector<76x182xf32> to vector<8x144xf32>
    %16 = arith.addf %14, %15 : vector<8x144xf32>
    %17 = vector.extract_strided_slice %3 {offsets = [56, 37], sizes = [8, 144], strides = [1, 1]} : vector<76x182xf32> to vector<8x144xf32>
    %18 = arith.addf %16, %17 : vector<8x144xf32>
    %19 = vector.extract_strided_slice %3 {offsets = [64, 38], sizes = [8, 144], strides = [1, 1]} : vector<76x182xf32> to vector<8x144xf32>
    %20 = arith.addf %18, %19 : vector<8x144xf32>
    %21 = vector.extract_strided_slice %3 {offsets = [72, 19], sizes = [4, 144], strides = [1, 1]} : vector<76x182xf32> to vector<4x144xf32>
    %22 = tpu.concatenate %20, %21 in 0 : vector<8x144xf32>, vector<4x144xf32> -> vector<12x144xf32>
    %c0_5 = arith.constant 0 : index
    %c0_6 = arith.constant 0 : index
    %23 = vector.load %arg4[%c0_5, %c0_6] : memref<12x1xf32, #tpu.memory_space<vmem>>, vector<12x1xf32>
    %24 = vector.broadcast %23 : vector<12x1xf32> to vector<12x144xf32>
    %25 = arith.addf %22, %24 : vector<12x144xf32>
    %c0_7 = arith.constant 0 : index
    %c0_8 = arith.constant 0 : index
    %26 = vector.load %arg5[%c0_7, %c0_8] : memref<4x12xf32, #tpu.memory_space<vmem>>, vector<4x12xf32>
    %cst_9 = arith.constant dense<0.000000e+00> : vector<4x144xf32>
    %27 = tpu.matmul %26, %25, %cst_9 {dimension_numbers = #tpu.dot_dimension_numbers<[1], [0], [0], [1], [0, 0, 1, 1], [], []>} : vector<4x12xf32>, vector<12x144xf32>, vector<4x144xf32> -> vector<4x144xf32>
    %c0_10 = arith.constant 0 : index
    %c0_11 = arith.constant 0 : index
    %28 = vector.load %arg6[%c0_10, %c0_11] : memref<4x1xf32, #tpu.memory_space<vmem>>, vector<4x1xf32>
    %29 = vector.broadcast %28 : vector<4x1xf32> to vector<4x144xf32>
    %30 = arith.addf %27, %29 : vector<4x144xf32>
    %31 = vector.extract_strided_slice %1 {offsets = [0, 19], sizes = [4, 144], strides = [1, 1]} : vector<4x182xf32> to vector<4x144xf32>
    %c0_12 = arith.constant 0 : index
    %c0_13 = arith.constant 0 : index
    %32 = vector.load %arg7[%c0_12, %c0_13] : memref<4x1xf32, #tpu.memory_space<vmem>>, vector<4x1xf32>
    %33 = vector.broadcast %32 : vector<4x1xf32> to vector<4x144xf32>
    %34 = arith.mulf %31, %33 : vector<4x144xf32>
    %c0_14 = arith.constant 0 : index
    %c0_15 = arith.constant 0 : index
    %35 = vector.load %arg8[%c0_14, %c0_15] : memref<4x1xf32, #tpu.memory_space<vmem>>, vector<4x1xf32>
    %36 = vector.broadcast %35 : vector<4x1xf32> to vector<4x144xf32>
    %37 = arith.addf %34, %36 : vector<4x144xf32>
    %38 = arith.addf %30, %37 : vector<4x144xf32>
    %cst_16 = arith.constant 0.000000e+00 : f32
    %39 = vector.broadcast %cst_16 : f32 to vector<4x144xf32>
    %40 = arith.maximumf %38, %39 : vector<4x144xf32>
    %c0_17 = arith.constant 0 : index
    %c0_18 = arith.constant 0 : index
    %c0_19 = arith.constant 0 : index
    %c0_20 = arith.constant 0 : index
    %41 = vector.load %arg9[%c0_17, %c0_18, %c0_19, %c0_20] : memref<1x1x4x144xf32, #tpu.memory_space<vmem>>, vector<1x1x4x144xf32>
    %42 = vector.shape_cast %41 : vector<1x1x4x144xf32> to vector<4x144xf32>
    %43 = vector.shape_cast %40 : vector<4x144xf32> to vector<1x1x4x144xf32>
    tpu.vector_store %arg9[%c0_17, %c0_18, %c0_19, %c0_20], %43 {strides = array<i32>} : memref<1x1x4x144xf32, #tpu.memory_space<vmem>>, vector<1x1x4x144xf32>,
    return
  }
  func.func @transform_0(%arg0: i32, %arg1: i32) -> (i32, i32, i32, i32) {
    %c0_i32 = arith.constant 0 : i32
    %c0_i32_0 = arith.constant 0 : i32
    %c0_i32_1 = arith.constant 0 : i32
    return %arg0, %arg1, %c0_i32, %c0_i32_0 : i32, i32, i32, i32
  }
  func.func @transform_1(%arg0: i32, %arg1: i32) -> (i32, i32) {
    %c0_i32 = arith.constant 0 : i32
    %c0_i32_0 = arith.constant 0 : i32
    %c0_i32_1 = arith.constant 0 : i32
    return %c0_i32, %c0_i32_0 : i32, i32
  }
  func.func @transform_2(%arg0: i32, %arg1: i32) -> (i32, i32) {
    %c0_i32 = arith.constant 0 : i32
    %c0_i32_0 = arith.constant 0 : i32
    %c0_i32_1 = arith.constant 0 : i32
    return %c0_i32, %c0_i32_0 : i32, i32
  }
  func.func @transform_3(%arg0: i32, %arg1: i32) -> (i32, i32) {
    %c0_i32 = arith.constant 0 : i32
    %c0_i32_0 = arith.constant 0 : i32
    %c0_i32_1 = arith.constant 0 : i32
    return %c0_i32, %c0_i32_0 : i32, i32
  }
  func.func @transform_4(%arg0: i32, %arg1: i32) -> (i32, i32) {
    %c0_i32 = arith.constant 0 : i32
    %c0_i32_0 = arith.constant 0 : i32
    %c0_i32_1 = arith.constant 0 : i32
    return %c0_i32, %c0_i32_0 : i32, i32
  }
  func.func @transform_5(%arg0: i32, %arg1: i32) -> (i32, i32) {
    %c0_i32 = arith.constant 0 : i32
    %c0_i32_0 = arith.constant 0 : i32
    %c0_i32_1 = arith.constant 0 : i32
    return %c0_i32, %c0_i32_0 : i32, i32
  }
  func.func @transform_6(%arg0: i32, %arg1: i32) -> (i32, i32) {
    %c0_i32 = arith.constant 0 : i32
    %c0_i32_0 = arith.constant 0 : i32
    %c0_i32_1 = arith.constant 0 : i32
    return %c0_i32, %c0_i32_0 : i32, i32
  }
  func.func @transform_7(%arg0: i32, %arg1: i32) -> (i32, i32, i32, i32) {
    %c0_i32 = arith.constant 0 : i32
    %c0_i32_0 = arith.constant 0 : i32
    %c0_i32_1 = arith.constant 0 : i32
    return %arg0, %arg1, %c0_i32, %c0_i32_0 : i32, i32, i32, i32
  }
}

</mosaic_0001>

<bundles_post_ra>
// kernel: tpu_custom_call.1
= control target key start
LH: loop header
LB: loop body
LE: loop exit
PB: predicated region body
PF: predicated region fallthrough
CT: control target
= control target key end

     0   :  { %12 = vsyncpa [#allocation3], 0  ;;  %s1264_s0 = inlined_call_operand.vmem [shape: f32[2,2,4,182], index: 0, kind: input, shape index: {}]   ;;  %s1265_s1 = inlined_call_operand.vmem [shape: f32[76,4], index: 1, kind: input, shape index: {}]   ;;  %s1266_s2 = inlined_call_operand.vmem [shape: f32[12,1], index: 2, kind: input, shape index: {}]   ;;  %s1267_s3 = inlined_call_operand.vmem [shape: f32[4,12], index: 3, kind: input, shape index: {}]   ;;  %s1268_s4 = inlined_call_operand.vmem [shape: f32[4,1], index: 4, kind: input, shape index: {}]   ;;  %s1269_s5 = inlined_call_operand.vmem [shape: f32[4,1], index: 5, kind: input, shape index: {}]   ;;  %s1270_s6 = inlined_call_operand.vmem [shape: f32[4,1], index: 6, kind: input, shape index: {}]   ;;  %s1271_s7 = inlined_call_operand.hbm [shape: f32[2,2,4,144], index: 7, kind: output, shape index: {}]  }
   0x1   :  { %14 = vsyncpa [#allocation3 + $0x1], 0  ;;  %s1047_s24 = smov 0   ;;  %s1049_s25 = smov 0  }
   0x2   :  { %s1051_s26 = smov 0   ;;  %s1053_s27 = smov 0  }
   0x3   :  { %s1055_s28 = smov 0   ;;  %s1057_s29 = smov 0  }
   0x4   :  { %s1059_s30 = smov 0   ;;  %s1061_s8 = smov 0  }
   0x5 LB: > { %1275 = sst [smem:[#allocation5_spill]] %s991_s30  ;;  %s774_s9 = sadd.s32 4294967295, %s995_s8   ;;  %s995_s8 = sphi %s1061_s8, %s20_s8   ;;  %s991_s30 = sphi %s1059_s30, %s1282_s30   ;;  %s987_s29 = sphi %s1057_s29, %s1287_s29   ;;  %s983_s28 = sphi %s1055_s28, %s1280_s28   ;;  %s979_s27 = sphi %s1053_s27, %s1286_s27   ;;  %s975_s26 = sphi %s1051_s26, %s1285_s26   ;;  %s971_s25 = sphi %s1049_s25, %s1284_s25   ;;  %s967_s24 = sphi %s1047_s24, %s1283_s24  }
   0x6   : > { %s775_s10 = sadd.s32 4294967294, %s995_s8   ;;  %s29_s11 = sadd.s32 1, %s987_s29 }
   0x7   : > { %p30_p0 = scmp.ge.s32.totalorder %s29_s11, 2  ;;  %s32_s12 = sadd.s32 1, %s991_s30 }
   0x8   : > { %p205_p1 = scmp.ne.s32.totalorder %s975_s26, %s971_s25  ;;  %p206_p2 = scmp.eq.s32.totalorder %s774_s9, 3 }
   0x9   : > { %s1289_s11 = smov (%p30_p0, %s29_s11), 0  ;;  %s1291_s12 = smov (!%p30_p0, %s32_s12), %s991_s30 }
   0xa   : > { %1276 = sst [smem:[#allocation6_spill]] %s1289_s11  ;;  %s191_s13 = ssub.s32 %s987_s29, %s1289_s11 }
   0xb   : > { %p1098_p3 = por %p206_p2, %p205_p1  ;;  %p34_p4 = scmp.ge.s32.totalorder %s1291_s12, 2 }
   0xc   : > { %p211_p5 = scmp.ne.s32.totalorder %s971_s25, %s967_s24  ;;  %p212_p6 = scmp.eq.s32.totalorder %s775_s10, 3 }
   0xd   : > { %p778_p7 = scmp.ge.s32.totalorder %s995_s8, 1  ;;  %s1293_s12 = smov (%p34_p4, %s1291_s12), 0 }
   0xe   : > { %1278 = sst [smem:[#allocation7_spill]] %s1293_s12  ;;  %p1107_p8 = por %p212_p6, %p211_p5 }
   0xf   : > { %p260_p9 = scmp.lt.s32.totalorder %s995_s8, 5  ;;  %s190_s16 = ssub.s32 %s991_s30, %s1293_s12 }
  0x10   : > { %s195_s17 = sadd.s32 1, %s975_s26  ;;  %s192_s18 = sor.u32 %s191_s13, %s190_s16 }
  0x11   : > { %p261_p10 = pnand %p778_p7, %p260_p9  ;;  %p193_p11 = scmp.eq.s32.totalorder %s192_s18, 0 }
  0x12   : > { %p296_p12 = scmp.lt.s32.totalorder (!%p261_p10), %s983_s28, 1  ;;  %p298_p13 = scmp.lt.s32.totalorder (!%p261_p10), %s979_s27, 1 }
  0x13   : > { %s1116_s19 = scalar_select %p193_p11, %s975_s26, %s195_s17  }
  0x14   : > { %264 = sbr.rel (%p261_p10) target bundleno = 488 (0x1e8), region = 48  ;;  %s1005_s18 = smov (!%p261_p10), 108  }
  0x15   : > { %s810_s17 = sshll.u32 (!%p261_p10), %s979_s27, 1  ;;  %s293_s30 = sand.u32 (!%p261_p10), 1, %s971_s25  }
  0x16   : > { %s779_s12 = sshll.u32 (!%p261_p10), %s293_s30, 3 }
  0x19   : > { %s297_s20 = scalar_select %p296_p12, %s983_s28, 1  ;;  %vm351_vm0 = vcmask 1043456   ;;  %v312_v1 = vld [vmem:[%s1265_s1 + $0x30] sm:$0xff]  ;;  %vm320_vm1 = vcmask 31744   ;;  %v306_v2 = vld [vmem:[%s1265_s1] sm:$0xff]  ;;  %v313_v5 = vld [vmem:[%s1265_s1 + $0x38] sm:$0xff] }
  0x1a   : > { %s299_s21 = scalar_select %p298_p13, %s979_s27, 1  ;;  %v307_v6 = vld [vmem:[%s1265_s1 + $0x8] sm:$0xff]  ;;  %v314_v7 = vld [vmem:[%s1265_s1 + $0x40] sm:$0xff]  ;;  %v308_v8 = vld [vmem:[%s1265_s1 + $0x10] sm:$0xff]  ;;  %v999_v19 = vmov 0   ;;  %vm456_vm2 = vcmask 1039360  }
  0x1b   : > { %s781_s22 = sshll.u32 %s297_s20, 2  ;;  %v315_v9 = vld [vmem:[%s1265_s1 + $0x48] sm:$0xf]  ;;  %v309_v10 = vld [vmem:[%s1265_s1 + $0x18] sm:$0xff]  ;;  %v310_v11 = vld [vmem:[%s1265_s1 + $0x20] sm:$0xff]  ;;  %s997_s20 = smov 92   ;;  %898 = vset.pattern.permute.xlu1 %v999_v19  ;;  %900 = vset.pattern.permute.xlu0 %v999_v19 }
  0x1c   : > { %s780_s23 = sshll.u32 %s299_s21, 1  ;;  %v311_v12 = vld [vmem:[%s1265_s1 + $0x28] sm:$0xff]  ;;  %s998_s21 = smov 127   ;;  %899 = vset.pattern.permute.xlu2 %v999_v19  ;;  %v555_v34 = vld [vmem:[%s1266_s2] sm:$0xff]  ;;  %vm468_vm3 = vcmask 1031168   ;;  %vm480_vm4 = vcmask 900096  }
  0x1d   : > { %s302_s9 = sadd.s32 %s781_s22, %s780_s23  ;;  %s1000_s22 = smov 91   ;;  %v556_v31 = vld [vmem:[%s1266_s2 + $0x8] sm:$0xf]  ;;  %v572_v36 = vld [vmem:[%s1268_s4] sm:$0xf]  ;;  %vm492_vm5 = vcmask 891904  }
  0x1e   : > { %s782_s10 = sshll.u32 %s302_s9, 2  ;;  %s1001_s23 = smov 90   ;;  %v628_v37 = vld [vmem:[%s1269_s5] sm:$0xf]  ;;  %vm504_vm6 = vcmask 883712   ;;  %vm516_vm7 = vcmask 752640  }
  0x1f   : > { %s304_s13 = scalar_lea.vmem %s1264_s0, %s782_s10  ;;  %s1002_s9 = smov 126   ;;  %v639_v38 = vld [vmem:[%s1270_s6] sm:$0xf]  ;;  %vm528_vm8 = vcmask 744448   ;;  %vm540_vm9 = vcmask 736256   ;;  %vm578_vm10 = vcmask 97280  }
  0x20   : > { %v1125_v0 = vld [vmem:[%s304_s13] sm:$0xff]  ;;  %s1003_s10 = smov 110   ;;  %s1004_s13 = smov 109   ;;  %vm670_vm11 = vcmask 130052  }
  0x21   : > { %317 = vst [vmem:[#allocation1] ss:$2 sm:$0xff] %v1125_v0  ;;  %s295_s27 = scalar_lea.vmem [#allocation2], %s779_s12  ;;  %vm671_vm12 = vmor %vm670_vm11, %vm351_vm0 }
  0x28   : > { %v318_v3 = vld.sshfl [vmem:[#allocation1] sm:$0xff pattern:$0x75316420]  ;;  %v319_v4 = vld.sshfl [vmem:[#allocation1 + $0x8] sm:$0xff pattern:$0x75316420] }
  0x29   : > { %815 = vmatpush.msk.msra.mxu2 %vm351_vm0, %v318_v3  ;;  %794 = vmatpush.msk.msra.mxu1 %vm351_vm0, %v319_v4 }
  0x2a   : > { %816 = vmatpush.msk.msra.mxu3 %vm351_vm0, %v319_v4  ;;  %790 = vmatmul.msk.f32.vlgmr.msra.gmra.mxu2 %vm320_vm1, %v312_v1 }
  0x2b   : > { %795 = vmatmul.msk.f32.vlgmr.msra.gmra.mxu1 %vm320_vm1, %v306_v2  ;;  %801 = vmatmul.msk.f32.vlgmr.msra.gmra.mxu3 %vm320_vm1, %v312_v1 }
  0x2c   : > { %783 = vmatpush.msk.msra.mxu0 %vm351_vm0, %v318_v3 }
  0x2d   : > { %784 = vmatmul.msk.f32.vlgmr.msra.gmra.mxu0 %vm320_vm1, %v306_v2 }
  0x32   : > { %791 = vmatmul.msk.f32.gmra.mxu2 %vm320_vm1, %v313_v5 }
  0x33   : > { %796 = vmatmul.msk.f32.gmra.mxu1 %vm320_vm1, %v307_v6  ;;  %802 = vmatmul.msk.f32.gmra.mxu3 %vm320_vm1, %v313_v5 }
  0x35   : > { %785 = vmatmul.msk.f32.gmra.mxu0 %vm320_vm1, %v307_v6 }
  0x3a   : > { %792 = vmatmul.msk.f32.gmra.mxu2 %vm320_vm1, %v314_v7 }
  0x3b   : > { %803 = vmatmul.msk.f32.gmra.mxu3 %vm320_vm1, %v314_v7  ;;  %797 = vmatmul.msk.f32.gmra.mxu1 %vm320_vm1, %v308_v8 }
  0x3d   : > { %786 = vmatmul.msk.f32.gmra.mxu0 %vm320_vm1, %v308_v8 }
  0x42   : > { %793 = vmatmul.msk.f32.gmra.mxu2 %vm320_vm1, %v315_v9 }
  0x43   : > { %804 = vmatmul.msk.f32.gmra.mxu3 %vm320_vm1, %v315_v9  ;;  %798 = vmatmul.msk.f32.gmra.mxu1 %vm320_vm1, %v309_v10 }
  0x45   : > { %787 = vmatmul.msk.f32.gmra.mxu0 %vm320_vm1, %v309_v10 }
  0x4b   : > { %799 = vmatmul.msk.f32.gmra.mxu1 %vm320_vm1, %v310_v11 }
  0x4d   : > { %788 = vmatmul.msk.f32.gmra.mxu0 %vm320_vm1, %v310_v11 }
  0x53   : > { %800 = vmatmul.msk.f32.gmra.mxu1 %vm320_vm1, %v311_v12 }
  0x55   : > { %789 = vmatmul.msk.f32.gmra.mxu0 %vm320_vm1, %v311_v12 }
  0xa8   : > { %v1182_v13 = vpop.f32.mrf.mxu1 }
  0xaa   : > { %v1184_v14 = vpop.f32.mrf.mxu0 }
  0xad   : > { %v391_v15 = vpop.f32.mrf.mxu2 }
  0xae   : > { %v438_v16 = vpop.f32.mrf.mxu3  ;;  %512 = vrot.lane.b32.xlu2 %v391_v15, %s997_s20 }
  0xaf   : > { %514 = vrot.lane.b32.xlu1 %v438_v16, %s997_s20 }
  0xb0   : > { %v423_v17 = vpop.f32.mrf.mxu1 }
  0xb1   : > { %454 = vrot.lane.b32.xlu0 %v423_v17, %s998_s21 }
  0xb2   : > { %v376_v18 = vpop.f32.mrf.mxu0 }
  0xb5   : > { %v394_v20 = vpop.f32.mrf.mxu2 }
  0xb6   : > { %v441_v21 = vpop.f32.mrf.mxu3 }
  0xb7   : > { %524 = vrot.lane.b32.xlu1 %v394_v20, %s1000_s22 }
  0xb8   : > { %v426_v22 = vpop.f32.mrf.mxu1 }
  0xb9   : > { %452 = vrot.lane.b32.xlu0 %v376_v18, %s998_s21 }
  0xba   : > { %v379_v23 = vpop.f32.mrf.mxu0 }
  0xbd   : > { %v397_v32 = vpop.f32.mrf.mxu2 }
  0xbe   : > { %v444_v24 = vpop.f32.mrf.mxu3 }
  0xbf   : > { %538 = vrot.lane.b32.xlu2 %v444_v24, %s1001_s23  ;;  %466 = vrot.lane.b32.xlu1 %v426_v22, %s1002_s9  ;;  %v571_v22 = vld [vmem:[%s1267_s3] sm:$0xf] }
  0xc0   : > { %v429_v25 = vpop.f32.mrf.mxu1 }
  0xc1   : > { %526 = vrot.lane.b32.xlu0 %v441_v21, %s1000_s22 }
  0xc2   : > { %v382_v26 = vpop.f32.mrf.mxu0 }
  0xc5   : > { %v400_v35 = vpop.f32.mrf.mxu2 }
  0xc6   : > { %v447_v27 = vpop.f32.mrf.mxu3 }
  0xc7   : > { %478 = vrot.lane.b32.xlu2 %v429_v25, %s1003_s10  ;;  %464 = vrot.lane.b32.xlu1 %v379_v23, %s1002_s9 }
  0xc8   : > { %v432_v28 = vpop.f32.mrf.mxu1 }
  0xc9   : > { %550 = vrot.lane.b32.xlu0 %v447_v27, %s1004_s13 }
  0xca   : > { %v385_v29 = vpop.f32.mrf.mxu0 }
  0xcf   : > { %476 = vrot.lane.b32.xlu2 %v382_v26, %s1003_s10  ;;  %488 = vrot.lane.b32.xlu1 %v385_v29, %s1004_s13  ;;  %s674_s10 = scalar_lea.sflag [#allocation3], %s293_s30 }
  0xd0   : > { %v435_v30 = vpop.f32.mrf.mxu1 }
  0xd1   : > { %490 = vrot.lane.b32.xlu0 %v432_v28, %s1004_s13 }
  0xd2   : > { %v388_v33 = vpop.f32.mrf.mxu0 }
  0xd7   : > { %502 = vrot.lane.b32.xlu2 %v435_v30, %s1005_s18  ;;  %564 = vperm.xlu1 %898, %v556_v31  }
  0xd9   : > { %500 = vrot.lane.b32.xlu0 %v388_v33, %s1005_s18  ;;  %s811_s18 = sshll.u32 %s983_s28, 2  ;;  %s689_s28 = sshll.u32 %s295_s27, 4  ;;  %s690_s28 = int_to_ptr.vmem [resolvable:$true] %s689_s28 }
  0xda   : > { %s685_s11 = sadd.s32 %s811_s18, %s810_s17 }
  0xdb   : > { %s812_s20 = sshll.u32 %s685_s11, 2  ;;  %s921_s11 = scalar_lea.hbm %s1271_s7, 32 }
  0xdc   : > { %s687_s9 = scalar_lea.hbm %s1271_s7, %s812_s20 }
  0xdf   : > { %536 = vrot.lane.b32.xlu2 %v397_v32, %s1001_s23  ;;  %559 = vperm.xlu1 %898, %v555_v34  }
  0xe1   : > { %548 = vrot.lane.b32.xlu0 %v400_v35, %s1004_s13 }
  0xe7   : > { %575 = vperm.xlu1 %898, %v572_v36   ;;  %631 = vperm.xlu2 %899, %v628_v37  }
  0xe9   : > { %642 = vperm.xlu0 %900, %v639_v38  }
 0x108   : > { %v513_v39 = vpop.permute.xlu2 %512 }
 0x119   : > { %v539_v41 = vpop.permute.xlu2 %538 }
 0x121   : > { %v515_v40 = vpop.permute.xlu1 %514  ;;  %v479_v45 = vpop.permute.xlu2 %478 }
 0x122   : > { %v517_v12 = vsel %vm516_vm7, %v513_v39, %v515_v40 }
 0x123   : > { %v455_v42 = vpop.permute.xlu0 %454 }
 0x124   : > { %v461_v51 = vadd.f32 %v455_v42, %v1182_v13  ;;  %v1006_v13 = vmov 839922192  }
 0x129   : > { %v525_v43 = vpop.permute.xlu1 %524  ;;  %v477_v48 = vpop.permute.xlu2 %476 }
 0x12a   : > { %v481_v63 = vsel %vm480_vm4, %v477_v48, %v479_v45 }
 0x12b   : > { %v453_v44 = vpop.permute.xlu0 %452 }
 0x12c   : > { %v457_v53 = vsel %vm456_vm2, %v453_v44, %v455_v42 }
 0x12d   : > { %v460_v58 = vadd.f32 %v457_v53, %v1184_v14  ;;  %v634_v14 = vunpack.c.l.s4 %v1006_v13 }
 0x12f   : > { %v635_v23 = vunpack.c.0.s8 %v634_v14 }
 0x131   : > { %v467_v46 = vpop.permute.xlu1 %466  ;;  %v503_v54 = vpop.permute.xlu2 %502 }
 0x132   : > { %v473_v52 = vadd.f32 %v467_v46, %v461_v51 }
 0x133   : > { %v527_v47 = vpop.permute.xlu0 %526 }
 0x134   : > { %v485_v57 = vadd.f32 %v479_v45, %v473_v52  ;;  %v529_v16 = vsel %vm528_vm8, %v525_v43, %v527_v47 }
 0x139   : > { %v465_v49 = vpop.permute.xlu1 %464  ;;  %v537_v6 = vpop.permute.xlu2 %536 }
 0x13a   : > { %v469_v56 = vsel %vm468_vm3, %v465_v49, %v467_v46  ;;  %v541_v20 = vsel %vm540_vm9, %v537_v6, %v539_v41 }
 0x13b   : > { %v551_v50 = vpop.permute.xlu0 %550  ;;  %v472_v61 = vadd.f32 %v469_v56, %v460_v58 }
 0x13d   : > { %v484_v3 = vadd.f32 %v481_v63, %v472_v61 }
 0x141   : > { %v489_v55 = vpop.permute.xlu1 %488  ;;  %v632_v26 = vpop.permute.xlu2 %631 }
 0x142   : > { %v636_v29 = vperm.slane %v632_v26, %v635_v23 }
 0x143   : > { %v491_v59 = vpop.permute.xlu0 %490 }
 0x144   : > { %v497_v60 = vadd.f32 %v491_v59, %v485_v57  ;;  %v493_v1 = vsel %vm492_vm5, %v489_v55, %v491_v59  ;;  %v638_v31 = vmul.f32 %v636_v29, %v1125_v0 }
 0x145   : > { %v496_v7 = vadd.f32 %v493_v1, %v484_v3 }
 0x146   : > { %v509_v62 = vadd.f32 %v503_v54, %v497_v60 }
 0x148   : > { %v521_v2 = vadd.f32 %v515_v40, %v509_v62 }
 0x149   : > { %v565_v4 = vpop.permute.xlu1 %564 }
 0x14a   : > { %v570_v5 = vadd.f32 %v565_v4, %v551_v50  ;;  %v533_v10 = vadd.f32 %v527_v47, %v521_v2 }
 0x14b   : > { %v501_v8 = vpop.permute.xlu0 %500 }
 0x14c   : > { %v505_v9 = vsel %vm504_vm6, %v501_v8, %v503_v54  ;;  %807 = vmatpush.msk.msrb.mxu3 %vm351_vm0, %v570_v5  ;;  %v545_v17 = vadd.f32 %v539_v41, %v533_v10 }
 0x14d   : > { %v508_v11 = vadd.f32 %v505_v9, %v496_v7 }
 0x14f   : > { %v520_v15 = vadd.f32 %v517_v12, %v508_v11 }
 0x151   : > { %v560_v18 = vpop.permute.xlu1 %559  ;;  %v532_v19 = vadd.f32 %v529_v16, %v520_v15 }
 0x152   : > { %v568_v21 = vadd.f32 %v560_v18, %v545_v17 }
 0x153   : > { %v549_v24 = vpop.permute.xlu0 %548  ;;  %v544_v25 = vadd.f32 %v541_v20, %v532_v19 }
 0x154   : > { %v552_v27 = vsel %vm492_vm5, %v549_v24, %v551_v50  ;;  %623 = vmatpush.msrb.mxu3 %v568_v21 }
 0x155   : > { %v569_v28 = vadd.f32 %v565_v4, %v552_v27  ;;  %808 = vmatmul.msk.f32.vlgmr.msrb.gmra.mxu3 %vm578_vm10, %v571_v22  ;;  %v567_v30 = vadd.f32 %v560_v18, %v544_v25 }
 0x157   : > { %805 = vmatpush.msk.msrb.mxu2 %vm351_vm0, %v569_v28 }
 0x159   : > { %603 = vmatpush.msrb.mxu2 %v567_v30  ;;  %v576_v37 = vpop.permute.xlu1 %575 }
 0x15a   : > { %806 = vmatmul.msk.f32.vlgmr.msrb.gmra.mxu2 %vm578_vm10, %v571_v22 }
 0x15b   : > { %v643_v32 = vpop.permute.xlu0 %642 }
 0x15c   : > { %v647_v33 = vperm.slane %v643_v32, %v635_v23 }
 0x15e   : > { %v649_v34 = vadd.f32 %v647_v33, %v638_v31 }
 0x160   : > { %651 = vst [vmem:[#allocation1] ss:$2 sm:$0xff] %v649_v34 }
 0x167   : > { %v652_v35 = vld.sshfl [vmem:[#allocation1] sm:$0xff pattern:$0x75316420]  ;;  %v653_v36 = vld.sshfl [vmem:[#allocation1 + $0x8] sm:$0xff pattern:$0x75316420] }
 0x168   : > { %654 = vrot.lane.b32.xlu1 %v652_v35, %s1004_s13  ;;  %656 = vrot.lane.b32.xlu2 %v653_v36, %s1004_s13  ;;  %s691_s13 = sshll.u32 %s687_s9, 4  ;;  %s692_s13 = int_to_ptr.hbm [resolvable:$true] %s691_s13 }
 0x169   : > { %s915_s23 = sshra.s32 %s692_s13, 4  ;;  %s916_s23 = int_to_ptr.hbm [resolvable:$true] %s915_s23 }
 0x16a   : > { %s917_s16 = scalar_lea.hbm %s916_s23, 8  ;;  %p922_p4 = scmp.lt.s32.totalorder %s916_s23, %s1271_s7 }
 0x16b   : > { %p918_p0 = scmp.ne.s32.totalorder %s916_s23, %s917_s16  ;;  %p923_p5 = scmp.lt.s32.totalorder %s921_s11, %s917_s16 }
 0x16d   : > { %p919_p1 = pnand %p918_p0, %p1098_p3  ;;  %p924_p6 = por %p923_p5, %p922_p4 }
 0x16f   : > { %p920_p2 = pneg %p919_p1 }
 0x171   : > { %p925_p7 = pnand %p924_p6, %p920_p2 }
 0x1c2   : > { %v657_v40 = vpop.permute.xlu2 %656 }
 0x1d8   : > { %v625_v38 = vpop.f32.mrf.mxu3 }
 0x1d9   : > { %v626_v39 = vadd.f32 %v625_v38, %v576_v37 }
 0x1da   : > { %v655_v41 = vpop.permute.xlu1 %654 }
 0x1db   : > { %v662_v0 = vadd.f32 %v657_v40, %v626_v39  ;;  %v658_v45 = vsel %vm492_vm5, %v655_v41, %v657_v40 }
 0x1dd   : > { %v605_v42 = vpop.f32.mrf.mxu2  ;;  %v664_v43 = vmax.f32 %v662_v0, 0.0 }
 0x1de   : > { %v606_v44 = vadd.f32 %v605_v42, %v576_v37 }
 0x1df   : > { %v667_v47 = vrot.slane %v664_v43, 4 }
 0x1e0   : > { %v661_v46 = vadd.f32 %v658_v45, %v606_v44 }
 0x1e2   : > { %v663_v48 = vmax.f32 %v661_v46, 0.0 }
 0x1e4   : > { %v668_v49 = vsel %vm351_vm0, %v663_v48, %v667_v47 }
 0x1e5   : > { %672 = vst.msk [vmem:[%s295_s27] sm:$0xff] %vm671_vm12, %v668_v49 }
 0x1e6   : > { %928 = shalt.err (!%p925_p7)
}
 0x1e7   : > { %817 = dma.vmem_to_hbm [thread:$0]  (%p1098_p3), %s690_s28, 128, %s692_s13, %s674_s10  }
 0x1e8 PF: > { %p823_p9 = scmp.ge.s32.totalorder %s995_s8, 2  ;;  %s703_s30 = sand.u32 1, %s967_s24  }
 0x1e9   : > { %s704_s21 = scalar_lea.sflag [#allocation3], %s703_s30 }
 0x1ea   : > { %p820_p10 = pnand %p823_p9, %p1107_p8 }
 0x1ec   : > { %p821_p11 = pneg %p820_p10 }
 0x1ee   : > { %962 = dma.done.wait (%p821_p11), %s704_s21, 128  }
 0x1ef   : > { %964 = vsyncadd (%p821_p11), %s704_s21, 4294967168  ;;  %s20_s8 = sadd.s32 1, %s995_s8   ;;  %s1280_s28 = sld [smem:[#allocation5_spill]] }
 0x1f0   : > { %p17_p12 = scmp.ge.s32.totalorder %s20_s8, 6   ;;  %s1281_s14 = sld [smem:[#allocation6_spill]] }
 0x1f1   : > { %s1282_s30 = sld [smem:[#allocation7_spill]]  ;;  %s1283_s24 = smov %s971_s25 }
 0x1f2   : > { %s1284_s25 = smov %s975_s26  ;;  %s1285_s26 = smov %s1116_s19 }
 0x1f3   : > { %s1286_s27 = smov %s987_s29  ;;  %19 = sbr.rel (!%p17_p12) target bundleno = 5 (0x5), region = 83 }
 0x1f6   : > { %s1287_s29 = smov %s1281_s14 }
 0x1f8   :  { %710 = vsyncpa [#allocation3], 1 }
 0x1f9   :  { %712 = vsyncpa [#allocation3 + $0x1], 1 }

</bundles_post_ra>
